<compile_context>
chip_gen: v7x
topology: tpu7x:2x2x1
jax: 0.10.0
libtpu: 0.0.40
codegen_flags: <defaults>
</compile_context>

<pallas_src>
import math

import jax
import jax.numpy as jnp
from jax import lax
from jax.experimental import pallas as pl
from jax.experimental.pallas import tpu as pltpu


_INV_SQRT2 = 0.7071067811865476  # 1/sqrt(2), precomputed constant


def _gelu_exact(v):
    # matches torch.nn.GELU() default (erf-based, exact); v is f32
    return 0.5 * v * (1.0 + lax.erf(v * _INV_SQRT2))


def _round_up(x, m):
    return ((x + m - 1) // m) * m


def _make_mlp_kernel(num_linear, compute_dtype):
    """Kernel: x_ref, (w0, b0, w1, b1, ...), o_ref. All Linear+GELU fused."""

    def kernel(*refs):
        x_ref = refs[0]
        o_ref = refs[-1]
        param_refs = refs[1:-1]
        assert len(param_refs) == 2 * num_linear

        h = x_ref[...]  # (row_block, d0_pad), compute_dtype
        for i in range(num_linear):
            w = param_refs[2 * i][...]        # (din_pad, dout_pad), compute_dtype
            b = param_refs[2 * i + 1][...]    # (1, dout_pad), f32
            # TODO(synk): Dropout before each hidden Linear is identity here
            # (eval mode); training-mode stochastic dropout is not implemented.
            acc = jnp.dot(h.astype(compute_dtype), w,
                          preferred_element_type=jnp.float32)
            acc = acc + b.astype(jnp.float32)  # bias + GELU in f32 (v5e VPU/EUP)
            h = _gelu_exact(acc)
        o_ref[...] = h.astype(o_ref.dtype)

    return kernel


def mlp_layers_forward(x, params, *, row_block=256, compute_dtype=None,
                       lane=128, sublane=8):
    """x: (N, word_embedding_dim); params: list of (W_(in,out), b_(1,out)).

    W is pre-transposed relative to nn.Linear (stored as (in, out)), so the
    kernel computes h = h @ W + b on the MXU.
    """
    if compute_dtype is None:
        compute_dtype = x.dtype
    compute_dtype = jnp.dtype(compute_dtype)
    out_dtype = x.dtype

    n_rows, in_dim = x.shape
    num_linear = len(params)
    out_dim = params[-1][0].shape[1]

    # Shape-chain sanity (catches layers[0] != item_embedding_dim style bugs).
    prev = in_dim
    for li, (w, b) in enumerate(params):
        if w.shape[0] != prev:
            raise ValueError(
                f"linear {li}: weight in-dim {w.shape[0]} != previous width {prev}")
        if b.shape != (1, w.shape[1]):
            raise ValueError(f"linear {li}: bias shape {b.shape} != (1, {w.shape[1]})")
        prev = w.shape[1]

    # ---- lane-pad every feature dim to a multiple of 128 ---------------------
    # Zero-padding is exact: padded input columns hit zero weight rows, padded
    # output columns get zero weight/bias, and gelu(0) == 0 propagates zeros.
    dims = [in_dim] + [w.shape[1] for w, _ in params]
    pdims = [_round_up(d, lane) for d in dims]

    padded_params = []
    for (w, b), din_p, dout_p in zip(params, pdims[:-1], pdims[1:]):
        wp = jnp.zeros((din_p, dout_p), compute_dtype)
        wp = wp.at[: w.shape[0], : w.shape[1]].set(w.astype(compute_dtype))
        bp = jnp.zeros((1, dout_p), jnp.float32)
        bp = bp.at[:, : b.shape[1]].set(b.astype(jnp.float32))
        padded_params.extend([wp, bp])

    # ---- row tiling: big tiles, ragged batch handled by zero row padding -----
    row_block = max(sublane, _round_up(row_block, sublane))
    row_block = min(row_block, _round_up(n_rows, sublane))
    rows_pad = _round_up(n_rows, row_block)
    grid = (pl.cdiv(rows_pad, row_block),)

    xp = jnp.zeros((rows_pad, pdims[0]), compute_dtype)
    xp = xp.at[:n_rows, :in_dim].set(x.astype(compute_dtype))

    # ---- VMEM budget: double-buffered act tiles + resident weights + slack ---
    act_bytes = (2 * row_block * pdims[0] * compute_dtype.itemsize
                 + 2 * row_block * pdims[-1] * jnp.dtype(out_dtype).itemsize)
    w_bytes = sum(int(p.size) * p.dtype.itemsize for p in padded_params)
    live_bytes = 3 * row_block * max(pdims) * 4  # f32 intermediates / accumulator
    budget = act_bytes + 2 * w_bytes + live_bytes + (8 << 20)
    vmem_limit = int(min(max(budget, 32 << 20), 64 << 20))  # 64 MiB = v7x physical

    kernel = _make_mlp_kernel(num_linear, compute_dtype)
    out_shape = jax.ShapeDtypeStruct((rows_pad, pdims[-1]), out_dtype)
    const_map = lambda i: (0, 0)

    # TODO(synk): for multi-K hidden dims, tile the output-feature dim with a
    # K-reduction grid axis instead of keeping every layer's full W resident.
    def _call(single_buffer_weights):
        in_specs = [pl.BlockSpec((row_block, pdims[0]), lambda i: (i, 0))]
        for p in padded_params:
            if single_buffer_weights:
                # constant index_map -> no need to double-buffer weights/biases
                in_specs.append(
                    pl.BlockSpec(p.shape, const_map,
                                 pipeline_mode=pl.Buffered(buffer_count=1)))
            else:
                in_specs.append(pl.BlockSpec(p.shape, const_map))
        out_spec = pl.BlockSpec((row_block, pdims[-1]), lambda i: (i, 0))
        return pl.pallas_call(
            kernel,
            out_shape=out_shape,
            grid=grid,
            in_specs=in_specs,
            out_specs=out_spec,
            compiler_params=pltpu.CompilerParams(
                dimension_semantics=("parallel",),
                vmem_limit_bytes=vmem_limit,
            ),
        )(xp, *padded_params)

    try:
        out = _call(True)
    except Exception:
        # Fallback if this jax build rejects Buffered(1) on pallas_call specs.
        out = _call(False)

    return out[:n_rows, :out_dim]


def init_mlp_layers_params(key, word_embedding_dim, item_embedding_dim, layers):
    """Xavier-normal weights (zero biases), matching _init_weights.

    Returns a list of (W, b) with W shaped (in, out) — transposed relative to
    PyTorch's nn.Linear weight (out, in).
    """
    assert layers[0] == item_embedding_dim, (
        "layers[0] must equal item_embedding_dim (fc output feeds mlp_layers)")
    params = []
    dims = [(word_embedding_dim, item_embedding_dim)] + list(
        zip(layers[:-1], layers[1:]))
    for (fan_in, fan_out) in dims:
        key, sub = jax.random.split(key)
        std = math.sqrt(2.0 / (fan_in + fan_out))
        w = jax.random.normal(sub, (fan_in, fan_out), dtype=jnp.float32) * std
        b = jnp.zeros((1, fan_out), dtype=jnp.float32)
        params.append((w, b))
    return params


def mlp_layers_reference(x, params, compute_dtype=None):
    if compute_dtype is None:
        compute_dtype = x.dtype
    h = x
    for w, b in params:
        acc = jnp.dot(h.astype(compute_dtype), w.astype(compute_dtype),
                      preferred_element_type=jnp.float32)
        acc = acc + b.astype(jnp.float32)
        h = _gelu_exact(acc)
    return h.astype(x.dtype)


if __name__ == "__main__":
    # Small, module-consistent shapes.
    batch = 16
    word_embedding_dim = 48
    item_embedding_dim = 32
    layers = [32, 64, 32]          # layers[0] must equal item_embedding_dim
    drop_rate = 0.1                # unused at inference (Dropout == identity)

    key = jax.random.PRNGKey(0)
    key, xkey = jax.random.split(key)
    x = jax.random.normal(xkey, (batch, word_embedding_dim), dtype=jnp.float32)

    params = init_mlp_layers_params(
        key, word_embedding_dim, item_embedding_dim, layers)

    # f32-on-MXU path (matches the erf-exact reference tightly).
    out = mlp_layers_forward(x, params, row_block=256)
    out = jax.block_until_ready(out)
    ref = mlp_layers_reference(x, params)
    assert out.shape == (batch, layers[-1])
    assert jnp.allclose(out, ref, atol=1e-4, rtol=1e-4), float(
        jnp.max(jnp.abs(out - ref)))

    # bf16-on-MXU path with f32 accumulation (v6e/v7x fast path).
    out_bf16 = mlp_layers_forward(x, params, row_block=256,
                                  compute_dtype=jnp.bfloat16)
    out_bf16 = jax.block_until_ready(out_bf16)
    ref_bf16 = mlp_layers_reference(x, params, compute_dtype=jnp.bfloat16)
    assert out_bf16.shape == (batch, layers[-1])
    assert jnp.allclose(out_bf16, ref_bf16, atol=1e-2, rtol=1e-2)

    print("KERNEL_OK")
</pallas_src>

<mosaic_0001>
module attributes {stable_mosaic.version = 11 : i64} {
  func.func @kernel(%arg0: i32, %arg1: memref<16x128xf32, #tpu.memory_space<vmem>>, %arg2: memref<128x128xf32, #tpu.memory_space<vmem>>, %arg3: memref<1x128xf32, #tpu.memory_space<vmem>>, %arg4: memref<128x128xf32, #tpu.memory_space<vmem>>, %arg5: memref<1x128xf32, #tpu.memory_space<vmem>>, %arg6: memref<128x128xf32, #tpu.memory_space<vmem>>, %arg7: memref<1x128xf32, #tpu.memory_space<vmem>>, %arg8: memref<16x128xf32, #tpu.memory_space<vmem>>) attributes {dimension_semantics = [#tpu.dimension_semantics<parallel>], iteration_bounds = array<i64: 1>, scalar_prefetch = 0 : i64, scratch_operands = 0 : i64, tpu.core_type = #tpu.core_type<tc>, window_params = [{transform_indices = @transform_0, window_bounds = array<i64: 16, 128>}, {pipeline_mode = #tpu.pipeline_mode<synchronous>, transform_indices = @transform_1, window_bounds = array<i64: 128, 128>}, {pipeline_mode = #tpu.pipeline_mode<synchronous>, transform_indices = @transform_2, window_bounds = array<i64: 1, 128>}, {pipeline_mode = #tpu.pipeline_mode<synchronous>, transform_indices = @transform_3, window_bounds = array<i64: 128, 128>}, {pipeline_mode = #tpu.pipeline_mode<synchronous>, transform_indices = @transform_4, window_bounds = array<i64: 1, 128>}, {pipeline_mode = #tpu.pipeline_mode<synchronous>, transform_indices = @transform_5, window_bounds = array<i64: 128, 128>}, {pipeline_mode = #tpu.pipeline_mode<synchronous>, transform_indices = @transform_6, window_bounds = array<i64: 1, 128>}, {transform_indices = @transform_7, window_bounds = array<i64: 16, 128>}]} {
    %c0 = arith.constant 0 : index
    %c0_0 = arith.constant 0 : index
    %0 = vector.load %arg1[%c0, %c0_0] : memref<16x128xf32, #tpu.memory_space<vmem>>, vector<16x128xf32>
    %c0_1 = arith.constant 0 : index
    %c0_2 = arith.constant 0 : index
    %1 = vector.load %arg2[%c0_1, %c0_2] : memref<128x128xf32, #tpu.memory_space<vmem>>, vector<128x128xf32>
    %c0_3 = arith.constant 0 : index
    %c0_4 = arith.constant 0 : index
    %2 = vector.load %arg3[%c0_3, %c0_4] : memref<1x128xf32, #tpu.memory_space<vmem>>, vector<1x128xf32>
    %cst = arith.constant dense<0.000000e+00> : vector<16x128xf32>
    %3 = tpu.matmul %0, %1, %cst {dimension_numbers = #tpu.dot_dimension_numbers<[1], [0], [0], [1], [0, 0, 1, 1], [], []>} : vector<16x128xf32>, vector<128x128xf32>, vector<16x128xf32> -> vector<16x128xf32>
    %4 = vector.broadcast %2 : vector<1x128xf32> to vector<16x128xf32>
    %5 = arith.addf %3, %4 : vector<16x128xf32>
    %cst_5 = arith.constant 5.000000e-01 : f32
    %6 = vector.broadcast %cst_5 : f32 to vector<16x128xf32>
    %7 = arith.mulf %6, %5 : vector<16x128xf32>
    %cst_6 = arith.constant 0.707106769 : f32
    %8 = vector.broadcast %cst_6 : f32 to vector<16x128xf32>
    %9 = arith.mulf %5, %8 : vector<16x128xf32>
    %10 = math.erf %9 : vector<16x128xf32>
    %cst_7 = arith.constant 1.000000e+00 : f32
    %11 = vector.broadcast %cst_7 : f32 to vector<16x128xf32>
    %12 = arith.addf %11, %10 : vector<16x128xf32>
    %13 = arith.mulf %7, %12 : vector<16x128xf32>
    %c0_8 = arith.constant 0 : index
    %c0_9 = arith.constant 0 : index
    %14 = vector.load %arg4[%c0_8, %c0_9] : memref<128x128xf32, #tpu.memory_space<vmem>>, vector<128x128xf32>
    %c0_10 = arith.constant 0 : index
    %c0_11 = arith.constant 0 : index
    %15 = vector.load %arg5[%c0_10, %c0_11] : memref<1x128xf32, #tpu.memory_space<vmem>>, vector<1x128xf32>
    %cst_12 = arith.constant dense<0.000000e+00> : vector<16x128xf32>
    %16 = tpu.matmul %13, %14, %cst_12 {dimension_numbers = #tpu.dot_dimension_numbers<[1], [0], [0], [1], [0, 0, 1, 1], [], []>} : vector<16x128xf32>, vector<128x128xf32>, vector<16x128xf32> -> vector<16x128xf32>
    %17 = vector.broadcast %15 : vector<1x128xf32> to vector<16x128xf32>
    %18 = arith.addf %16, %17 : vector<16x128xf32>
    %cst_13 = arith.constant 5.000000e-01 : f32
    %19 = vector.broadcast %cst_13 : f32 to vector<16x128xf32>
    %20 = arith.mulf %19, %18 : vector<16x128xf32>
    %cst_14 = arith.constant 0.707106769 : f32
    %21 = vector.broadcast %cst_14 : f32 to vector<16x128xf32>
    %22 = arith.mulf %18, %21 : vector<16x128xf32>
    %23 = math.erf %22 : vector<16x128xf32>
    %cst_15 = arith.constant 1.000000e+00 : f32
    %24 = vector.broadcast %cst_15 : f32 to vector<16x128xf32>
    %25 = arith.addf %24, %23 : vector<16x128xf32>
    %26 = arith.mulf %20, %25 : vector<16x128xf32>
    %c0_16 = arith.constant 0 : index
    %c0_17 = arith.constant 0 : index
    %27 = vector.load %arg6[%c0_16, %c0_17] : memref<128x128xf32, #tpu.memory_space<vmem>>, vector<128x128xf32>
    %c0_18 = arith.constant 0 : index
    %c0_19 = arith.constant 0 : index
    %28 = vector.load %arg7[%c0_18, %c0_19] : memref<1x128xf32, #tpu.memory_space<vmem>>, vector<1x128xf32>
    %cst_20 = arith.constant dense<0.000000e+00> : vector<16x128xf32>
    %29 = tpu.matmul %26, %27, %cst_20 {dimension_numbers = #tpu.dot_dimension_numbers<[1], [0], [0], [1], [0, 0, 1, 1], [], []>} : vector<16x128xf32>, vector<128x128xf32>, vector<16x128xf32> -> vector<16x128xf32>
    %30 = vector.broadcast %28 : vector<1x128xf32> to vector<16x128xf32>
    %31 = arith.addf %29, %30 : vector<16x128xf32>
    %cst_21 = arith.constant 5.000000e-01 : f32
    %32 = vector.broadcast %cst_21 : f32 to vector<16x128xf32>
    %33 = arith.mulf %32, %31 : vector<16x128xf32>
    %cst_22 = arith.constant 0.707106769 : f32
    %34 = vector.broadcast %cst_22 : f32 to vector<16x128xf32>
    %35 = arith.mulf %31, %34 : vector<16x128xf32>
    %36 = math.erf %35 : vector<16x128xf32>
    %cst_23 = arith.constant 1.000000e+00 : f32
    %37 = vector.broadcast %cst_23 : f32 to vector<16x128xf32>
    %38 = arith.addf %37, %36 : vector<16x128xf32>
    %39 = arith.mulf %33, %38 : vector<16x128xf32>
    %c0_24 = arith.constant 0 : index
    %c0_25 = arith.constant 0 : index
    %40 = vector.load %arg8[%c0_24, %c0_25] : memref<16x128xf32, #tpu.memory_space<vmem>>, vector<16x128xf32>
    tpu.vector_store %arg8[%c0_24, %c0_25], %39 {strides = array<i32>} : memref<16x128xf32, #tpu.memory_space<vmem>>, vector<16x128xf32>,
    return
  }
  func.func @transform_0(%arg0: i32) -> (i32, i32) {
    %c0_i32 = arith.constant 0 : i32
    %c0_i32_0 = arith.constant 0 : i32
    return %arg0, %c0_i32 : i32, i32
  }
  func.func @transform_1(%arg0: i32) -> (i32, i32) {
    %c0_i32 = arith.constant 0 : i32
    %c0_i32_0 = arith.constant 0 : i32
    %c0_i32_1 = arith.constant 0 : i32
    return %c0_i32, %c0_i32_0 : i32, i32
  }
  func.func @transform_2(%arg0: i32) -> (i32, i32) {
    %c0_i32 = arith.constant 0 : i32
    %c0_i32_0 = arith.constant 0 : i32
    %c0_i32_1 = arith.constant 0 : i32
    return %c0_i32, %c0_i32_0 : i32, i32
  }
  func.func @transform_3(%arg0: i32) -> (i32, i32) {
    %c0_i32 = arith.constant 0 : i32
    %c0_i32_0 = arith.constant 0 : i32
    %c0_i32_1 = arith.constant 0 : i32
    return %c0_i32, %c0_i32_0 : i32, i32
  }
  func.func @transform_4(%arg0: i32) -> (i32, i32) {
    %c0_i32 = arith.constant 0 : i32
    %c0_i32_0 = arith.constant 0 : i32
    %c0_i32_1 = arith.constant 0 : i32
    return %c0_i32, %c0_i32_0 : i32, i32
  }
  func.func @transform_5(%arg0: i32) -> (i32, i32) {
    %c0_i32 = arith.constant 0 : i32
    %c0_i32_0 = arith.constant 0 : i32
    %c0_i32_1 = arith.constant 0 : i32
    return %c0_i32, %c0_i32_0 : i32, i32
  }
  func.func @transform_6(%arg0: i32) -> (i32, i32) {
    %c0_i32 = arith.constant 0 : i32
    %c0_i32_0 = arith.constant 0 : i32
    %c0_i32_1 = arith.constant 0 : i32
    return %c0_i32, %c0_i32_0 : i32, i32
  }
  func.func @transform_7(%arg0: i32) -> (i32, i32) {
    %c0_i32 = arith.constant 0 : i32
    %c0_i32_0 = arith.constant 0 : i32
    return %arg0, %c0_i32 : i32, i32
  }
}

module attributes {stable_mosaic.version = 11 : i64} {
  func.func @kernel(%arg0: i32, %arg1: memref<16x128xf32, #tpu.memory_space<vmem>>, %arg2: memref<128x128xf32, #tpu.memory_space<vmem>>, %arg3: memref<1x128xf32, #tpu.memory_space<vmem>>, %arg4: memref<128x128xf32, #tpu.memory_space<vmem>>, %arg5: memref<1x128xf32, #tpu.memory_space<vmem>>, %arg6: memref<128x128xf32, #tpu.memory_space<vmem>>, %arg7: memref<1x128xf32, #tpu.memory_space<vmem>>, %arg8: memref<16x128xf32, #tpu.memory_space<vmem>>) attributes {dimension_semantics = [#tpu.dimension_semantics<parallel>], iteration_bounds = array<i64: 1>, scalar_prefetch = 0 : i64, scratch_operands = 0 : i64, tpu.core_type = #tpu.core_type<tc>, window_params = [{transform_indices = @transform_0, window_bounds = array<i64: 16, 128>}, {pipeline_mode = #tpu.pipeline_mode<synchronous>, transform_indices = @transform_1, window_bounds = array<i64: 128, 128>}, {pipeline_mode = #tpu.pipeline_mode<synchronous>, transform_indices = @transform_2, window_bounds = array<i64: 1, 128>}, {pipeline_mode = #tpu.pipeline_mode<synchronous>, transform_indices = @transform_3, window_bounds = array<i64: 128, 128>}, {pipeline_mode = #tpu.pipeline_mode<synchronous>, transform_indices = @transform_4, window_bounds = array<i64: 1, 128>}, {pipeline_mode = #tpu.pipeline_mode<synchronous>, transform_indices = @transform_5, window_bounds = array<i64: 128, 128>}, {pipeline_mode = #tpu.pipeline_mode<synchronous>, transform_indices = @transform_6, window_bounds = array<i64: 1, 128>}, {transform_indices = @transform_7, window_bounds = array<i64: 16, 128>}]} {
    %c0 = arith.constant 0 : index
    %c0_0 = arith.constant 0 : index
    %0 = vector.load %arg1[%c0, %c0_0] : memref<16x128xf32, #tpu.memory_space<vmem>>, vector<16x128xf32>
    %c0_1 = arith.constant 0 : index
    %c0_2 = arith.constant 0 : index
    %1 = vector.load %arg2[%c0_1, %c0_2] : memref<128x128xf32, #tpu.memory_space<vmem>>, vector<128x128xf32>
    %c0_3 = arith.constant 0 : index
    %c0_4 = arith.constant 0 : index
    %2 = vector.load %arg3[%c0_3, %c0_4] : memref<1x128xf32, #tpu.memory_space<vmem>>, vector<1x128xf32>
    %cst = arith.constant dense<0.000000e+00> : vector<16x128xf32>
    %3 = tpu.matmul %0, %1, %cst {dimension_numbers = #tpu.dot_dimension_numbers<[1], [0], [0], [1], [0, 0, 1, 1], [], []>} : vector<16x128xf32>, vector<128x128xf32>, vector<16x128xf32> -> vector<16x128xf32>
    %4 = vector.broadcast %2 : vector<1x128xf32> to vector<16x128xf32>
    %5 = arith.addf %3, %4 : vector<16x128xf32>
    %cst_5 = arith.constant 5.000000e-01 : f32
    %6 = vector.broadcast %cst_5 : f32 to vector<16x128xf32>
    %7 = arith.mulf %6, %5 : vector<16x128xf32>
    %cst_6 = arith.constant 0.707106769 : f32
    %8 = vector.broadcast %cst_6 : f32 to vector<16x128xf32>
    %9 = arith.mulf %5, %8 : vector<16x128xf32>
    %10 = math.erf %9 : vector<16x128xf32>
    %cst_7 = arith.constant 1.000000e+00 : f32
    %11 = vector.broadcast %cst_7 : f32 to vector<16x128xf32>
    %12 = arith.addf %11, %10 : vector<16x128xf32>
    %13 = arith.mulf %7, %12 : vector<16x128xf32>
    %c0_8 = arith.constant 0 : index
    %c0_9 = arith.constant 0 : index
    %14 = vector.load %arg4[%c0_8, %c0_9] : memref<128x128xf32, #tpu.memory_space<vmem>>, vector<128x128xf32>
    %c0_10 = arith.constant 0 : index
    %c0_11 = arith.constant 0 : index
    %15 = vector.load %arg5[%c0_10, %c0_11] : memref<1x128xf32, #tpu.memory_space<vmem>>, vector<1x128xf32>
    %cst_12 = arith.constant dense<0.000000e+00> : vector<16x128xf32>
    %16 = tpu.matmul %13, %14, %cst_12 {dimension_numbers = #tpu.dot_dimension_numbers<[1], [0], [0], [1], [0, 0, 1, 1], [], []>} : vector<16x128xf32>, vector<128x128xf32>, vector<16x128xf32> -> vector<16x128xf32>
    %17 = vector.broadcast %15 : vector<1x128xf32> to vector<16x128xf32>
    %18 = arith.addf %16, %17 : vector<16x128xf32>
    %cst_13 = arith.constant 5.000000e-01 : f32
    %19 = vector.broadcast %cst_13 : f32 to vector<16x128xf32>
    %20 = arith.mulf %19, %18 : vector<16x128xf32>
    %cst_14 = arith.constant 0.707106769 : f32
    %21 = vector.broadcast %cst_14 : f32 to vector<16x128xf32>
    %22 = arith.mulf %18, %21 : vector<16x128xf32>
    %23 = math.erf %22 : vector<16x128xf32>
    %cst_15 = arith.constant 1.000000e+00 : f32
    %24 = vector.broadcast %cst_15 : f32 to vector<16x128xf32>
    %25 = arith.addf %24, %23 : vector<16x128xf32>
    %26 = arith.mulf %20, %25 : vector<16x128xf32>
    %c0_16 = arith.constant 0 : index
    %c0_17 = arith.constant 0 : index
    %27 = vector.load %arg6[%c0_16, %c0_17] : memref<128x128xf32, #tpu.memory_space<vmem>>, vector<128x128xf32>
    %c0_18 = arith.constant 0 : index
    %c0_19 = arith.constant 0 : index
    %28 = vector.load %arg7[%c0_18, %c0_19] : memref<1x128xf32, #tpu.memory_space<vmem>>, vector<1x128xf32>
    %cst_20 = arith.constant dense<0.000000e+00> : vector<16x128xf32>
    %29 = tpu.matmul %26, %27, %cst_20 {dimension_numbers = #tpu.dot_dimension_numbers<[1], [0], [0], [1], [0, 0, 1, 1], [], []>} : vector<16x128xf32>, vector<128x128xf32>, vector<16x128xf32> -> vector<16x128xf32>
    %30 = vector.broadcast %28 : vector<1x128xf32> to vector<16x128xf32>
    %31 = arith.addf %29, %30 : vector<16x128xf32>
    %cst_21 = arith.constant 5.000000e-01 : f32
    %32 = vector.broadcast %cst_21 : f32 to vector<16x128xf32>
    %33 = arith.mulf %32, %31 : vector<16x128xf32>
    %cst_22 = arith.constant 0.707106769 : f32
    %34 = vector.broadcast %cst_22 : f32 to vector<16x128xf32>
    %35 = arith.mulf %31, %34 : vector<16x128xf32>
    %36 = math.erf %35 : vector<16x128xf32>
    %cst_23 = arith.constant 1.000000e+00 : f32
    %37 = vector.broadcast %cst_23 : f32 to vector<16x128xf32>
    %38 = arith.addf %37, %36 : vector<16x128xf32>
    %39 = arith.mulf %33, %38 : vector<16x128xf32>
    %c0_24 = arith.constant 0 : index
    %c0_25 = arith.constant 0 : index
    %40 = vector.load %arg8[%c0_24, %c0_25] : memref<16x128xf32, #tpu.memory_space<vmem>>, vector<16x128xf32>
    tpu.vector_store %arg8[%c0_24, %c0_25], %39 {strides = array<i32>} : memref<16x128xf32, #tpu.memory_space<vmem>>, vector<16x128xf32>,
    return
  }
  func.func @transform_0(%arg0: i32) -> (i32, i32) {
    %c0_i32 = arith.constant 0 : i32
    %c0_i32_0 = arith.constant 0 : i32
    return %arg0, %c0_i32 : i32, i32
  }
  func.func @transform_1(%arg0: i32) -> (i32, i32) {
    %c0_i32 = arith.constant 0 : i32
    %c0_i32_0 = arith.constant 0 : i32
    %c0_i32_1 = arith.constant 0 : i32
    return %c0_i32, %c0_i32_0 : i32, i32
  }
  func.func @transform_2(%arg0: i32) -> (i32, i32) {
    %c0_i32 = arith.constant 0 : i32
    %c0_i32_0 = arith.constant 0 : i32
    %c0_i32_1 = arith.constant 0 : i32
    return %c0_i32, %c0_i32_0 : i32, i32
  }
  func.func @transform_3(%arg0: i32) -> (i32, i32) {
    %c0_i32 = arith.constant 0 : i32
    %c0_i32_0 = arith.constant 0 : i32
    %c0_i32_1 = arith.constant 0 : i32
    return %c0_i32, %c0_i32_0 : i32, i32
  }
  func.func @transform_4(%arg0: i32) -> (i32, i32) {
    %c0_i32 = arith.constant 0 : i32
    %c0_i32_0 = arith.constant 0 : i32
    %c0_i32_1 = arith.constant 0 : i32
    return %c0_i32, %c0_i32_0 : i32, i32
  }
  func.func @transform_5(%arg0: i32) -> (i32, i32) {
    %c0_i32 = arith.constant 0 : i32
    %c0_i32_0 = arith.constant 0 : i32
    %c0_i32_1 = arith.constant 0 : i32
    return %c0_i32, %c0_i32_0 : i32, i32
  }
  func.func @transform_6(%arg0: i32) -> (i32, i32) {
    %c0_i32 = arith.constant 0 : i32
    %c0_i32_0 = arith.constant 0 : i32
    %c0_i32_1 = arith.constant 0 : i32
    return %c0_i32, %c0_i32_0 : i32, i32
  }
  func.func @transform_7(%arg0: i32) -> (i32, i32) {
    %c0_i32 = arith.constant 0 : i32
    %c0_i32_0 = arith.constant 0 : i32
    return %arg0, %c0_i32 : i32, i32
  }
}

</mosaic_0001>

<bundles_post_ra>
// kernel: tpu_custom_call.1
= control target key start
LH: loop header
LB: loop body
LE: loop exit
PB: predicated region body
PF: predicated region fallthrough
CT: control target
= control target key end

     0   :  { %12 = vsyncpa [#allocation3], 0  ;;  %s969_s0 = inlined_call_operand.hbm [shape: f32[16,128], index: 0, kind: input, shape index: {}]   ;;  %s970_s1 = inlined_call_operand.hbm [shape: f32[128,128], index: 1, kind: input, shape index: {}]   ;;  %s971_s2 = inlined_call_operand.vmem [shape: f32[1,128], index: 2, kind: input, shape index: {}]   ;;  %s972_s3 = inlined_call_operand.hbm [shape: f32[128,128], index: 3, kind: input, shape index: {}]   ;;  %s973_s4 = inlined_call_operand.vmem [shape: f32[1,128], index: 4, kind: input, shape index: {}]   ;;  %s974_s5 = inlined_call_operand.hbm [shape: f32[128,128], index: 5, kind: input, shape index: {}]   ;;  %s975_s6 = inlined_call_operand.vmem [shape: f32[1,128], index: 6, kind: input, shape index: {}]   ;;  %s976_s7 = inlined_call_operand.hbm [shape: f32[16,128], index: 7, kind: output, shape index: {}]  }
   0x1   :  { %13 = vsyncpa [#allocation6], 0 }
   0x2   :  { %14 = vsyncpa [#allocation9], 0 }
   0x3   :  { %15 = vsyncpa [#allocation4], 0  ;;  %s824_s24 = smov [#allocation5]   ;;  %s825_s26 = smov [#allocation2]  }
   0x4   :  { %s33_s25 = sshll.u32 %s824_s24, 4  ;;  %s21_s27 = sshll.u32 %s825_s26, 4  ;;  %s34_s25 = int_to_ptr.vmem [resolvable:$true] %s33_s25  ;;  %s871_s27 = int_to_ptr.vmem [resolvable:$true] %s21_s27 }
   0x5   :  { %s706_s30 = scalar_lea.hbm %s970_s1, 2048 }
   0x6   :  { %p707_p0 = scmp.ne.s32.totalorder %s970_s1, %s706_s30  ;;  %p710_p1 = scmp.lt.u32.totalorder %s706_s30, %s970_s1 }
   0x8   :  { %p712_p2 = pnand %p710_p1, %p707_p0 }
   0xa   :  { %715 = shalt.err (!%p712_p2)
}
   0xb   :  { %s716_s12 = scalar_lea.vmem %s34_s25, 2048  ;;  %p721_p4 = scmp.lt.s32.totalorder %s34_s25, %s34_s25 }
   0xc   :  { %p717_p3 = scmp.ne.s32.totalorder %s34_s25, %s716_s12  ;;  %p722_p5 = scmp.lt.s32.totalorder %s716_s12, %s716_s12 }
   0xe   :  { %p723_p6 = por %p722_p5, %p721_p4 }
  0x10   :  { %p724_p7 = pnand %p723_p6, %p717_p3 }
  0x12   :  { %727 = shalt.err (!%p724_p7)
}
  0x13   :  { %s826_s13 = smov 128   ;;  %s827_s14 = smov 8  }
  0x14   :  { %39 = dma.hbm_to_vmem [thread:$0]  %s970_s1, 2048, %s34_s25, [#allocation6], %s826_s13, %s826_s13, %s827_s14  }
  0x15   :  { %s728_s19 = scalar_lea.hbm %s969_s0, 256 }
  0x16   :  { %p729_p8 = scmp.ne.s32.totalorder %s969_s0, %s728_s19  ;;  %p732_p9 = scmp.lt.u32.totalorder %s728_s19, %s969_s0 }
  0x18   :  { %p734_p10 = pnand %p732_p9, %p729_p8 }
  0x1a   :  { %737 = shalt.err (!%p734_p10)
}
  0x1b   :  { %s738_s24 = scalar_lea.vmem %s871_s27, 256  ;;  %p743_p12 = scmp.lt.s32.totalorder %s871_s27, %s871_s27 }
  0x1c   :  { %p739_p11 = scmp.ne.s32.totalorder %s871_s27, %s738_s24  ;;  %p744_p13 = scmp.lt.s32.totalorder %s738_s24, %s738_s24 }
  0x1e   :  { %p745_p0 = por %p744_p13, %p743_p12 }
  0x20   :  { %p746_p1 = pnand %p745_p0, %p739_p11 }
  0x22   :  { %749 = shalt.err (!%p746_p1)
}
  0x23   :  { %27 = dma.hbm_to_vmem [thread:$0]  %s969_s0, 256, %s871_s27, [#allocation3], %s826_s13, %s826_s13, %s827_s14  }
  0x24   :  { %s828_s26 = smov [#allocation7]   ;;  %s829_s29 = smov [#allocation8]  }
  0x25   :  { %s47_s28 = sshll.u32 %s828_s26, 4  ;;  %s61_s30 = sshll.u32 %s829_s29, 4  ;;  %s48_s28 = int_to_ptr.vmem [resolvable:$true] %s47_s28  ;;  %s908_s30 = int_to_ptr.vmem [resolvable:$true] %s61_s30 }
  0x26   :  { %s750_s10 = scalar_lea.hbm %s972_s3, 2048 }
  0x27   :  { %p751_p2 = scmp.ne.s32.totalorder %s972_s3, %s750_s10  ;;  %p754_p3 = scmp.lt.u32.totalorder %s750_s10, %s972_s3 }
  0x29   :  { %p756_p4 = pnand %p754_p3, %p751_p2 }
  0x2b   :  { %759 = shalt.err (!%p756_p4)
}
  0x2c   :  { %s760_s0 = scalar_lea.vmem %s48_s28, 2048  ;;  %p765_p6 = scmp.lt.s32.totalorder %s48_s28, %s48_s28 }
  0x2d   :  { %p761_p5 = scmp.ne.s32.totalorder %s48_s28, %s760_s0  ;;  %p766_p7 = scmp.lt.s32.totalorder %s760_s0, %s760_s0 }
  0x2f   :  { %p767_p8 = por %p766_p7, %p765_p6 }
  0x31   :  { %p768_p9 = pnand %p767_p8, %p761_p5 }
  0x33   :  { %771 = shalt.err (!%p768_p9)
}
  0x34   :  { %53 = dma.hbm_to_vmem [thread:$0]  %s972_s3, 2048, %s48_s28, [#allocation6], %s826_s13, %s826_s13, %s827_s14  }
  0x35   :  { %s772_s20 = scalar_lea.hbm %s974_s5, 2048 }
  0x36   :  { %p773_p10 = scmp.ne.s32.totalorder %s974_s5, %s772_s20  ;;  %p776_p11 = scmp.lt.u32.totalorder %s772_s20, %s974_s5 }
  0x38   :  { %p778_p12 = pnand %p776_p11, %p773_p10 }
  0x3a   :  { %781 = shalt.err (!%p778_p12)
}
  0x3b   :  { %s782_s1 = scalar_lea.vmem %s908_s30, 2048  ;;  %p787_p0 = scmp.lt.s32.totalorder %s908_s30, %s908_s30 }
  0x3c   :  { %p783_p13 = scmp.ne.s32.totalorder %s908_s30, %s782_s1  ;;  %p788_p1 = scmp.lt.s32.totalorder %s782_s1, %s782_s1 }
  0x3e   :  { %p789_p2 = por %p788_p1, %p787_p0 }
  0x40   :  { %p790_p3 = pnand %p789_p2, %p783_p13 }
  0x42   :  { %793 = shalt.err (!%p790_p3)
}
  0x43   :  { %67 = dma.hbm_to_vmem [thread:$0]  %s974_s5, 2048, %s908_s30, [#allocation9], %s826_s13, %s826_s13, %s827_s14  }
  0x44   :  { %816 = dma.done.wait [#allocation3], 256  }
  0x45   :  { %817 = vsyncadd [#allocation3], 4294967040 }
  0x46   :  { %818 = dma.done.wait [#allocation6], 4096  }
  0x47   :  { %819 = vsyncadd [#allocation6], 4294963200 }
  0x48   :  { %820 = dma.done.wait [#allocation9], 2048  }
  0x49   :  { %821 = vsyncadd [#allocation9], 4294965248  ;;  %v84_v0 = vld [vmem:[#allocation5] sm:$0xff]  ;;  %v85_v1 = vld [vmem:[#allocation5 + $0x8] sm:$0xff]  ;;  %s830_s30 = smov [#allocation10]  }
  0x4a   :  { %v86_v2 = vld [vmem:[#allocation5 + $0x10] sm:$0xff]  ;;  %v591_v3 = vpack.c.bf16 %v85_v1, %v84_v0  ;;  %v87_v4 = vld [vmem:[#allocation5 + $0x18] sm:$0xff]  ;;  %v88_v6 = vld [vmem:[#allocation5 + $0x20] sm:$0xff]  ;;  %s415_s8 = sshll.u32 %s830_s30, 4  ;;  %s416_s8 = int_to_ptr.vmem [resolvable:$true] %s415_s8 }
  0x4b   :  { %v595_v5 = vpack.c.bf16 %v87_v4, %v86_v2  ;;  %v89_v7 = vld [vmem:[#allocation5 + $0x28] sm:$0xff]  ;;  %v90_v9 = vld [vmem:[#allocation5 + $0x30] sm:$0xff]  ;;  %v91_v10 = vld [vmem:[#allocation5 + $0x38] sm:$0xff]  ;;  %p799_p5 = scmp.lt.s32.totalorder %s416_s8, %s416_s8 }
  0x4c   :  { %592 = vmatprep.subr.bf16.mxu0 %v591_v3  ;;  %v599_v8 = vpack.c.bf16 %v89_v7, %v88_v6  ;;  %v82_v11 = vld [vmem:[#allocation2] sm:$0xff]  ;;  %v192_v12 = vld [vmem:[#allocation7] sm:$0xff]  ;;  %v193_v13 = vld [vmem:[#allocation7 + $0x8] sm:$0xff]  ;;  %v603_v20 = vpack.c.bf16 %v91_v10, %v90_v9 }
  0x4d   :  { %594 = vmatpush3.bf16.msra.mxu0 %v591_v3  ;;  %518 = vmatprep.mubr.f32.mxu0 %v82_v11  ;;  %v194_v14 = vld [vmem:[#allocation7 + $0x10] sm:$0xff]  ;;  %v623_v15 = vpack.c.bf16 %v193_v13, %v192_v12  ;;  %v195_v16 = vld [vmem:[#allocation7 + $0x18] sm:$0xff]  ;;  %v196_v18 = vld [vmem:[#allocation7 + $0x20] sm:$0xff] }
  0x4e   :  { %596 = vmatprep.subr.bf16.mxu0 %v595_v5  ;;  %v627_v17 = vpack.c.bf16 %v195_v16, %v194_v14  ;;  %v197_v19 = vld [vmem:[#allocation7 + $0x28] sm:$0xff]  ;;  %v92_v21 = vld [vmem:[#allocation5 + $0x40] sm:$0xff]  ;;  %v94_v25 = vld [vmem:[#allocation5 + $0x50] sm:$0xff] }
  0x4f   :  { %624 = vmatprep.subr.bf16.mxu1 %v623_v15  ;;  %v93_v22 = vld [vmem:[#allocation5 + $0x48] sm:$0xff]  ;;  %v631_v23 = vpack.c.bf16 %v197_v19, %v196_v18  ;;  %v95_v26 = vld [vmem:[#allocation5 + $0x58] sm:$0xff]  ;;  %v96_v28 = vld [vmem:[#allocation5 + $0x60] sm:$0xff] }
  0x50   :  { %626 = vmatpush3.bf16.msra.mxu1 %v623_v15  ;;  %v607_v24 = vpack.c.bf16 %v93_v22, %v92_v21  ;;  %v611_v27 = vpack.c.bf16 %v95_v26, %v94_v25  ;;  %v97_v29 = vld [vmem:[#allocation5 + $0x68] sm:$0xff]  ;;  %v98_v31 = vld [vmem:[#allocation5 + $0x70] sm:$0xff]  ;;  %v99_v32 = vld [vmem:[#allocation5 + $0x78] sm:$0xff] }
  0x51   :  { %598 = vmatpush3.bf16.msra.mxu0 %v595_v5  ;;  %628 = vmatprep.subr.bf16.mxu1 %v627_v17  ;;  %v615_v30 = vpack.c.bf16 %v97_v29, %v96_v28  ;;  %v619_v33 = vpack.c.bf16 %v99_v32, %v98_v31  ;;  %v83_v34 = vld [vmem:[#allocation2 + $0x8] sm:$0xff]  ;;  %v198_v35 = vld [vmem:[#allocation7 + $0x30] sm:$0xff]  ;;  %v200_v38 = vld [vmem:[#allocation7 + $0x40] sm:$0xff] }
  0x52   :  { %600 = vmatprep.subr.bf16.mxu0 %v599_v8  ;;  %v199_v36 = vld [vmem:[#allocation7 + $0x38] sm:$0xff]  ;;  %v201_v39 = vld [vmem:[#allocation7 + $0x48] sm:$0xff]  ;;  %v202_v41 = vld [vmem:[#allocation7 + $0x50] sm:$0xff] }
  0x53   :  { %v635_v37 = vpack.c.bf16 %v199_v36, %v198_v35  ;;  %v639_v40 = vpack.c.bf16 %v201_v39, %v200_v38  ;;  %v203_v42 = vld [vmem:[#allocation7 + $0x58] sm:$0xff]  ;;  %v204_v44 = vld [vmem:[#allocation7 + $0x60] sm:$0xff]  ;;  %v205_v45 = vld [vmem:[#allocation7 + $0x68] sm:$0xff] }
  0x54   :  { %630 = vmatpush3.bf16.msra.mxu1 %v627_v17  ;;  %v643_v43 = vpack.c.bf16 %v203_v42, %v202_v41  ;;  %v647_v46 = vpack.c.bf16 %v205_v45, %v204_v44  ;;  %v206_v47 = vld [vmem:[#allocation7 + $0x70] sm:$0xff]  ;;  %v207_v48 = vld [vmem:[#allocation7 + $0x78] sm:$0xff]  ;;  %v300_v50 = vld [vmem:[#allocation8] sm:$0xff] }
  0x55   :  { %602 = vmatpush3.bf16.msra.mxu0 %v599_v8  ;;  %632 = vmatprep.subr.bf16.mxu1 %v631_v23  ;;  %v651_v49 = vpack.c.bf16 %v207_v48, %v206_v47  ;;  %v301_v51 = vld [vmem:[#allocation8 + $0x8] sm:$0xff]  ;;  %v302_v52 = vld [vmem:[#allocation8 + $0x10] sm:$0xff]  ;;  %v303_v54 = vld [vmem:[#allocation8 + $0x18] sm:$0xff] }
  0x56   :  { %604 = vmatprep.subr.bf16.mxu0 %v603_v20  ;;  %v655_v53 = vpack.c.bf16 %v301_v51, %v300_v50  ;;  %v659_v55 = vpack.c.bf16 %v303_v54, %v302_v52  ;;  %v304_v56 = vld [vmem:[#allocation8 + $0x20] sm:$0xff]  ;;  %v305_v57 = vld [vmem:[#allocation8 + $0x28] sm:$0xff]  ;;  %v429_v59 = vld [vmem:[%s971_s2] ss:$0 sm:$0xff] }
  0x57   :  { %v663_v58 = vpack.c.bf16 %v305_v57, %v304_v56  ;;  %v306_v10 = vld [vmem:[#allocation8 + $0x30] sm:$0xff]  ;;  %v307_v11 = vld [vmem:[#allocation8 + $0x38] sm:$0xff]  ;;  %v308_v13 = vld [vmem:[#allocation8 + $0x40] sm:$0xff] }
  0x58   :  { %634 = vmatpush3.bf16.msra.mxu1 %v631_v23  ;;  %v667_v12 = vpack.c.bf16 %v307_v11, %v306_v10  ;;  %v309_v14 = vld [vmem:[#allocation8 + $0x48] sm:$0xff]  ;;  %v310_v16 = vld [vmem:[#allocation8 + $0x50] sm:$0xff]  ;;  %v311_v17 = vld [vmem:[#allocation8 + $0x58] sm:$0xff] }
  0x59   :  { %606 = vmatpush3.bf16.msra.mxu0 %v603_v20  ;;  %636 = vmatprep.subr.bf16.mxu1 %v635_v37  ;;  %v671_v15 = vpack.c.bf16 %v309_v14, %v308_v13  ;;  %v675_v18 = vpack.c.bf16 %v311_v17, %v310_v16  ;;  %v312_v19 = vld [vmem:[#allocation8 + $0x60] sm:$0xff]  ;;  %v313_v20 = vld [vmem:[#allocation8 + $0x68] sm:$0xff]  ;;  %v314_v22 = vld [vmem:[#allocation8 + $0x70] sm:$0xff] }
  0x5a   :  { %608 = vmatprep.subr.bf16.mxu0 %v607_v24  ;;  %v679_v21 = vpack.c.bf16 %v313_v20, %v312_v19  ;;  %v315_v23 = vld [vmem:[#allocation8 + $0x78] sm:$0xff]  ;;  %v430_v25 = vld [vmem:[%s973_s4] ss:$0 sm:$0xff] }
  0x5c   :  { %638 = vmatpush3.bf16.msra.mxu1 %v635_v37 }
  0x5d   :  { %610 = vmatpush3.bf16.msra.mxu0 %v607_v24  ;;  %640 = vmatprep.subr.bf16.mxu1 %v639_v40  ;;  %v683_v24 = vpack.c.bf16 %v315_v23, %v314_v22 }
  0x5e   :  { %612 = vmatprep.subr.bf16.mxu0 %v611_v27 }
  0x60   :  { %642 = vmatpush3.bf16.msra.mxu1 %v639_v40  ;;  %v431_v40 = vld [vmem:[%s975_s6] ss:$0 sm:$0xff]  ;;  %s794_s6 = scalar_lea.vmem %s416_s8, 256 }
  0x61   :  { %614 = vmatpush3.bf16.msra.mxu0 %v611_v27  ;;  %644 = vmatprep.subr.bf16.mxu1 %v643_v43  ;;  %p795_p4 = scmp.ne.s32.totalorder %s416_s8, %s794_s6  ;;  %p800_p6 = scmp.lt.s32.totalorder %s794_s6, %s794_s6 }
  0x62   :  { %616 = vmatprep.subr.bf16.mxu0 %v615_v30 }
  0x63   :  { %p801_p7 = por %p800_p6, %p799_p5 }
  0x64   :  { %646 = vmatpush3.bf16.msra.mxu1 %v643_v43 }
  0x65   :  { %618 = vmatpush3.bf16.msra.mxu0 %v615_v30  ;;  %648 = vmatprep.subr.bf16.mxu1 %v647_v46  ;;  %p802_p8 = pnand %p801_p7, %p795_p4 }
  0x66   :  { %620 = vmatprep.subr.bf16.mxu0 %v619_v33 }
  0x68   :  { %650 = vmatpush3.bf16.msra.mxu1 %v647_v46 }
  0x69   :  { %622 = vmatpush3.bf16.msra.mxu0 %v619_v33  ;;  %652 = vmatprep.subr.bf16.mxu1 %v651_v49 }
  0x6a   :  { %656 = vmatprep.subr.bf16.mxu0 %v655_v53 }
  0x6c   :  { %519 = vmatmul.mubr.f32.vlgmr.msra.gmra.mrb[0].mxu0 %v83_v34  ;;  %654 = vmatpush3.bf16.msra.mxu1 %v651_v49 }
  0x6d   :  { %658 = vmatpush3.bf16.msra.mxu0 %v655_v53 }
  0x6e   :  { %660 = vmatprep.subr.bf16.mxu0 %v659_v55 }
  0x71   :  { %662 = vmatpush3.bf16.msra.mxu0 %v659_v55 }
  0x72   :  { %664 = vmatprep.subr.bf16.mxu0 %v663_v58 }
  0x75   :  { %666 = vmatpush3.bf16.msra.mxu0 %v663_v58 }
  0x76   :  { %668 = vmatprep.subr.bf16.mxu0 %v667_v12 }
  0x79   :  { %670 = vmatpush3.bf16.msra.mxu0 %v667_v12 }
  0x7a   :  { %672 = vmatprep.subr.bf16.mxu0 %v671_v15 }
  0x7d   :  { %674 = vmatpush3.bf16.msra.mxu0 %v671_v15 }
  0x7e   :  { %676 = vmatprep.subr.bf16.mxu0 %v675_v18 }
  0x81   :  { %678 = vmatpush3.bf16.msra.mxu0 %v675_v18 }
  0x82   :  { %680 = vmatprep.subr.bf16.mxu0 %v679_v21 }
  0x85   :  { %682 = vmatpush3.bf16.msra.mxu0 %v679_v21 }
  0x86   :  { %684 = vmatprep.subr.bf16.mxu0 %v683_v24 }
  0x89   :  { %686 = vmatpush3.bf16.msra.mxu0 %v683_v24 }
 0x13f   :  { %v520_v60 = vpop.f32.mrb[0].mxu0 }
 0x140   :  { %v179_v61 = vadd.f32 %v520_v60, %v429_v59  ;;  %v173_v62 = vpop.f32.mrb[1].mxu0 }
 0x141   :  { %v174_v63 = vadd.f32 %v429_v59, %v173_v62 }
 0x142   :  { %v185_v0 = vmul.f32 0.70710677, %v179_v61  ;;  %v183_v7 = vmul.f32 0.5, %v179_v61 }
 0x143   :  { %v184_v1 = vmul.f32 0.70710677, %v174_v63  ;;  %v182_v5 = vmul.f32 0.5, %v174_v63 }
 0x144   :  { %694 = verf.f32 %v185_v0 }
 0x145   :  { %696 = verf.f32 %v184_v1 }
 0x14e   :  { %v695_v2 = vpop.eup %694 }
 0x14f   :  { %v697_v3 = vpop.eup %696  ;;  %v189_v4 = vadd.f32 1.0, %v695_v2 }
 0x150   :  { %v188_v6 = vadd.f32 1.0, %v697_v3 }
 0x151   :  { %v191_v9 = vmul.f32 %v189_v4, %v183_v7 }
 0x152   :  { %v190_v8 = vmul.f32 %v188_v6, %v182_v5 }
 0x154   :  { %553 = vmatprep.mubr.f32.mxu1 %v190_v8 }
 0x155   :  { %554 = vmatmul.mubr.f32.vlgmr.msra.gmra.mrb[0].mxu1 %v191_v9 }
 0x228   :  { %v555_v26 = vpop.f32.mrb[0].mxu1 }
 0x229   :  { %v287_v27 = vadd.f32 %v555_v26, %v430_v25  ;;  %v281_v28 = vpop.f32.mrb[1].mxu1 }
 0x22a   :  { %v282_v29 = vadd.f32 %v430_v25, %v281_v28 }
 0x22b   :  { %v293_v30 = vmul.f32 0.70710677, %v287_v27  ;;  %v291_v37 = vmul.f32 0.5, %v287_v27 }
 0x22c   :  { %v292_v31 = vmul.f32 0.70710677, %v282_v29  ;;  %v290_v35 = vmul.f32 0.5, %v282_v29 }
 0x22d   :  { %698 = verf.f32 %v293_v30 }
 0x22e   :  { %700 = verf.f32 %v292_v31 }
 0x237   :  { %v699_v32 = vpop.eup %698 }
 0x238   :  { %v701_v33 = vpop.eup %700  ;;  %v297_v34 = vadd.f32 1.0, %v699_v32 }
 0x239   :  { %v296_v36 = vadd.f32 1.0, %v701_v33 }
 0x23a   :  { %v299_v39 = vmul.f32 %v297_v34, %v291_v37 }
 0x23b   :  { %v298_v38 = vmul.f32 %v296_v36, %v290_v35 }
 0x23d   :  { %588 = vmatprep.mubr.f32.mxu0 %v298_v38 }
 0x23e   :  { %589 = vmatmul.mubr.f32.vlgmr.msra.gmra.mrb[2].mxu0 %v299_v39 }
 0x311   :  { %v590_v41 = vpop.f32.mrb[2].mxu0 }
 0x312   :  { %v395_v42 = vadd.f32 %v590_v41, %v431_v40  ;;  %v389_v43 = vpop.f32.mrb[3].mxu0 }
 0x313   :  { %v390_v44 = vadd.f32 %v431_v40, %v389_v43 }
 0x314   :  { %v401_v45 = vmul.f32 0.70710677, %v395_v42  ;;  %v399_v49 = vmul.f32 0.5, %v395_v42 }
 0x315   :  { %v400_v46 = vmul.f32 0.70710677, %v390_v44  ;;  %v398_v51 = vmul.f32 0.5, %v390_v44 }
 0x316   :  { %702 = verf.f32 %v401_v45 }
 0x317   :  { %704 = verf.f32 %v400_v46 }
 0x320   :  { %v703_v47 = vpop.eup %702 }
 0x321   :  { %v705_v48 = vpop.eup %704  ;;  %v405_v50 = vadd.f32 1.0, %v703_v47 }
 0x322   :  { %v404_v52 = vadd.f32 1.0, %v705_v48 }
 0x323   :  { %v407_v53 = vmul.f32 %v405_v50, %v399_v49 }
 0x324   :  { %v406_v54 = vmul.f32 %v404_v52, %v398_v51 }
 0x325   :  { %409 = vst [vmem:[#allocation10 + $0x8] sm:$0xff] %v407_v53 }
 0x326   :  { %408 = vst [vmem:[#allocation10] sm:$0xff] %v406_v54 }
 0x327   :  { %805 = shalt.err (!%p802_p8)
}
 0x328   :  { %s806_s11 = scalar_lea.hbm %s976_s7, 256 }
 0x329   :  { %p807_p9 = scmp.ne.s32.totalorder %s976_s7, %s806_s11  ;;  %p810_p10 = scmp.lt.u32.totalorder %s806_s11, %s976_s7 }
 0x32b   :  { %p812_p11 = pnand %p810_p10, %p807_p9 }
 0x32d   :  { %815 = shalt.err (!%p812_p11)
}
 0x32e   :  { %421 = dma.vmem_to_hbm [thread:$0]  %s416_s8, 256, %s976_s7, [#allocation4], %s826_s13, %s826_s13, %s827_s14  }
 0x32f   :  { %822 = dma.done.wait [#allocation4], 256  }
 0x330   :  { %823 = vsyncadd [#allocation4], 4294967040 }
 0x331   :  { %425 = vsyncpa [#allocation3], 1 }
 0x332   :  { %426 = vsyncpa [#allocation6], 1 }
 0x333   :  { %427 = vsyncpa [#allocation9], 1 }
 0x334   :  { %428 = vsyncpa [#allocation4], 1 }

// kernel: tpu_custom_call.1
= control target key start
LH: loop header
LB: loop body
LE: loop exit
PB: predicated region body
PF: predicated region fallthrough
CT: control target
= control target key end

     0   :  { %12 = vsyncpa [#allocation3], 0  ;;  %s969_s0 = inlined_call_operand.hbm [shape: f32[16,128], index: 0, kind: input, shape index: {}]   ;;  %s970_s1 = inlined_call_operand.hbm [shape: f32[128,128], index: 1, kind: input, shape index: {}]   ;;  %s971_s2 = inlined_call_operand.vmem [shape: f32[1,128], index: 2, kind: input, shape index: {}]   ;;  %s972_s3 = inlined_call_operand.hbm [shape: f32[128,128], index: 3, kind: input, shape index: {}]   ;;  %s973_s4 = inlined_call_operand.vmem [shape: f32[1,128], index: 4, kind: input, shape index: {}]   ;;  %s974_s5 = inlined_call_operand.hbm [shape: f32[128,128], index: 5, kind: input, shape index: {}]   ;;  %s975_s6 = inlined_call_operand.vmem [shape: f32[1,128], index: 6, kind: input, shape index: {}]   ;;  %s976_s7 = inlined_call_operand.hbm [shape: f32[16,128], index: 7, kind: output, shape index: {}]  }
   0x1   :  { %13 = vsyncpa [#allocation6], 0 }
   0x2   :  { %14 = vsyncpa [#allocation9], 0 }
   0x3   :  { %15 = vsyncpa [#allocation4], 0  ;;  %s824_s24 = smov [#allocation5]   ;;  %s825_s26 = smov [#allocation2]  }
   0x4   :  { %s33_s25 = sshll.u32 %s824_s24, 4  ;;  %s21_s27 = sshll.u32 %s825_s26, 4  ;;  %s34_s25 = int_to_ptr.vmem [resolvable:$true] %s33_s25  ;;  %s871_s27 = int_to_ptr.vmem [resolvable:$true] %s21_s27 }
   0x5   :  { %s706_s30 = scalar_lea.hbm %s970_s1, 2048 }
   0x6   :  { %p707_p0 = scmp.ne.s32.totalorder %s970_s1, %s706_s30  ;;  %p710_p1 = scmp.lt.u32.totalorder %s706_s30, %s970_s1 }
   0x8   :  { %p712_p2 = pnand %p710_p1, %p707_p0 }
   0xa   :  { %715 = shalt.err (!%p712_p2)
}
   0xb   :  { %s716_s12 = scalar_lea.vmem %s34_s25, 2048  ;;  %p721_p4 = scmp.lt.s32.totalorder %s34_s25, %s34_s25 }
   0xc   :  { %p717_p3 = scmp.ne.s32.totalorder %s34_s25, %s716_s12  ;;  %p722_p5 = scmp.lt.s32.totalorder %s716_s12, %s716_s12 }
   0xe   :  { %p723_p6 = por %p722_p5, %p721_p4 }
  0x10   :  { %p724_p7 = pnand %p723_p6, %p717_p3 }
  0x12   :  { %727 = shalt.err (!%p724_p7)
}
  0x13   :  { %s826_s13 = smov 128   ;;  %s827_s14 = smov 8  }
  0x14   :  { %39 = dma.hbm_to_vmem [thread:$0]  %s970_s1, 2048, %s34_s25, [#allocation6], %s826_s13, %s826_s13, %s827_s14  }
  0x15   :  { %s728_s19 = scalar_lea.hbm %s969_s0, 256 }
  0x16   :  { %p729_p8 = scmp.ne.s32.totalorder %s969_s0, %s728_s19  ;;  %p732_p9 = scmp.lt.u32.totalorder %s728_s19, %s969_s0 }
  0x18   :  { %p734_p10 = pnand %p732_p9, %p729_p8 }
  0x1a   :  { %737 = shalt.err (!%p734_p10)
}
  0x1b   :  { %s738_s24 = scalar_lea.vmem %s871_s27, 256  ;;  %p743_p12 = scmp.lt.s32.totalorder %s871_s27, %s871_s27 }
  0x1c   :  { %p739_p11 = scmp.ne.s32.totalorder %s871_s27, %s738_s24  ;;  %p744_p13 = scmp.lt.s32.totalorder %s738_s24, %s738_s24 }
  0x1e   :  { %p745_p0 = por %p744_p13, %p743_p12 }
  0x20   :  { %p746_p1 = pnand %p745_p0, %p739_p11 }
  0x22   :  { %749 = shalt.err (!%p746_p1)
}
  0x23   :  { %27 = dma.hbm_to_vmem [thread:$0]  %s969_s0, 256, %s871_s27, [#allocation3], %s826_s13, %s826_s13, %s827_s14  }
  0x24   :  { %s828_s26 = smov [#allocation7]   ;;  %s829_s29 = smov [#allocation8]  }
  0x25   :  { %s47_s28 = sshll.u32 %s828_s26, 4  ;;  %s61_s30 = sshll.u32 %s829_s29, 4  ;;  %s48_s28 = int_to_ptr.vmem [resolvable:$true] %s47_s28  ;;  %s908_s30 = int_to_ptr.vmem [resolvable:$true] %s61_s30 }
  0x26   :  { %s750_s10 = scalar_lea.hbm %s972_s3, 2048 }
  0x27   :  { %p751_p2 = scmp.ne.s32.totalorder %s972_s3, %s750_s10  ;;  %p754_p3 = scmp.lt.u32.totalorder %s750_s10, %s972_s3 }
  0x29   :  { %p756_p4 = pnand %p754_p3, %p751_p2 }
  0x2b   :  { %759 = shalt.err (!%p756_p4)
}
  0x2c   :  { %s760_s0 = scalar_lea.vmem %s48_s28, 2048  ;;  %p765_p6 = scmp.lt.s32.totalorder %s48_s28, %s48_s28 }
  0x2d   :  { %p761_p5 = scmp.ne.s32.totalorder %s48_s28, %s760_s0  ;;  %p766_p7 = scmp.lt.s32.totalorder %s760_s0, %s760_s0 }
  0x2f   :  { %p767_p8 = por %p766_p7, %p765_p6 }
  0x31   :  { %p768_p9 = pnand %p767_p8, %p761_p5 }
  0x33   :  { %771 = shalt.err (!%p768_p9)
}
  0x34   :  { %53 = dma.hbm_to_vmem [thread:$0]  %s972_s3, 2048, %s48_s28, [#allocation6], %s826_s13, %s826_s13, %s827_s14  }
  0x35   :  { %s772_s20 = scalar_lea.hbm %s974_s5, 2048 }
  0x36   :  { %p773_p10 = scmp.ne.s32.totalorder %s974_s5, %s772_s20  ;;  %p776_p11 = scmp.lt.u32.totalorder %s772_s20, %s974_s5 }
  0x38   :  { %p778_p12 = pnand %p776_p11, %p773_p10 }
  0x3a   :  { %781 = shalt.err (!%p778_p12)
}
  0x3b   :  { %s782_s1 = scalar_lea.vmem %s908_s30, 2048  ;;  %p787_p0 = scmp.lt.s32.totalorder %s908_s30, %s908_s30 }
  0x3c   :  { %p783_p13 = scmp.ne.s32.totalorder %s908_s30, %s782_s1  ;;  %p788_p1 = scmp.lt.s32.totalorder %s782_s1, %s782_s1 }
  0x3e   :  { %p789_p2 = por %p788_p1, %p787_p0 }
  0x40   :  { %p790_p3 = pnand %p789_p2, %p783_p13 }
  0x42   :  { %793 = shalt.err (!%p790_p3)
}
  0x43   :  { %67 = dma.hbm_to_vmem [thread:$0]  %s974_s5, 2048, %s908_s30, [#allocation9], %s826_s13, %s826_s13, %s827_s14  }
  0x44   :  { %816 = dma.done.wait [#allocation3], 256  }
  0x45   :  { %817 = vsyncadd [#allocation3], 4294967040 }
  0x46   :  { %818 = dma.done.wait [#allocation6], 4096  }
  0x47   :  { %819 = vsyncadd [#allocation6], 4294963200 }
  0x48   :  { %820 = dma.done.wait [#allocation9], 2048  }
  0x49   :  { %821 = vsyncadd [#allocation9], 4294965248  ;;  %v84_v0 = vld [vmem:[#allocation5] sm:$0xff]  ;;  %v85_v1 = vld [vmem:[#allocation5 + $0x8] sm:$0xff]  ;;  %s830_s30 = smov [#allocation10]  }
  0x4a   :  { %v86_v2 = vld [vmem:[#allocation5 + $0x10] sm:$0xff]  ;;  %v591_v3 = vpack.c.bf16 %v85_v1, %v84_v0  ;;  %v87_v4 = vld [vmem:[#allocation5 + $0x18] sm:$0xff]  ;;  %v88_v6 = vld [vmem:[#allocation5 + $0x20] sm:$0xff]  ;;  %s415_s8 = sshll.u32 %s830_s30, 4  ;;  %s416_s8 = int_to_ptr.vmem [resolvable:$true] %s415_s8 }
  0x4b   :  { %v595_v5 = vpack.c.bf16 %v87_v4, %v86_v2  ;;  %v89_v7 = vld [vmem:[#allocation5 + $0x28] sm:$0xff]  ;;  %v90_v9 = vld [vmem:[#allocation5 + $0x30] sm:$0xff]  ;;  %v91_v10 = vld [vmem:[#allocation5 + $0x38] sm:$0xff]  ;;  %p799_p5 = scmp.lt.s32.totalorder %s416_s8, %s416_s8 }
  0x4c   :  { %592 = vmatprep.subr.bf16.mxu0 %v591_v3  ;;  %v599_v8 = vpack.c.bf16 %v89_v7, %v88_v6  ;;  %v82_v11 = vld [vmem:[#allocation2] sm:$0xff]  ;;  %v192_v12 = vld [vmem:[#allocation7] sm:$0xff]  ;;  %v193_v13 = vld [vmem:[#allocation7 + $0x8] sm:$0xff]  ;;  %v603_v20 = vpack.c.bf16 %v91_v10, %v90_v9 }
  0x4d   :  { %594 = vmatpush3.bf16.msra.mxu0 %v591_v3  ;;  %518 = vmatprep.mubr.f32.mxu0 %v82_v11  ;;  %v194_v14 = vld [vmem:[#allocation7 + $0x10] sm:$0xff]  ;;  %v623_v15 = vpack.c.bf16 %v193_v13, %v192_v12  ;;  %v195_v16 = vld [vmem:[#allocation7 + $0x18] sm:$0xff]  ;;  %v196_v18 = vld [vmem:[#allocation7 + $0x20] sm:$0xff] }
  0x4e   :  { %596 = vmatprep.subr.bf16.mxu0 %v595_v5  ;;  %v627_v17 = vpack.c.bf16 %v195_v16, %v194_v14  ;;  %v197_v19 = vld [vmem:[#allocation7 + $0x28] sm:$0xff]  ;;  %v92_v21 = vld [vmem:[#allocation5 + $0x40] sm:$0xff]  ;;  %v94_v25 = vld [vmem:[#allocation5 + $0x50] sm:$0xff] }
  0x4f   :  { %624 = vmatprep.subr.bf16.mxu1 %v623_v15  ;;  %v93_v22 = vld [vmem:[#allocation5 + $0x48] sm:$0xff]  ;;  %v631_v23 = vpack.c.bf16 %v197_v19, %v196_v18  ;;  %v95_v26 = vld [vmem:[#allocation5 + $0x58] sm:$0xff]  ;;  %v96_v28 = vld [vmem:[#allocation5 + $0x60] sm:$0xff] }
  0x50   :  { %626 = vmatpush3.bf16.msra.mxu1 %v623_v15  ;;  %v607_v24 = vpack.c.bf16 %v93_v22, %v92_v21  ;;  %v611_v27 = vpack.c.bf16 %v95_v26, %v94_v25  ;;  %v97_v29 = vld [vmem:[#allocation5 + $0x68] sm:$0xff]  ;;  %v98_v31 = vld [vmem:[#allocation5 + $0x70] sm:$0xff]  ;;  %v99_v32 = vld [vmem:[#allocation5 + $0x78] sm:$0xff] }
  0x51   :  { %598 = vmatpush3.bf16.msra.mxu0 %v595_v5  ;;  %628 = vmatprep.subr.bf16.mxu1 %v627_v17  ;;  %v615_v30 = vpack.c.bf16 %v97_v29, %v96_v28  ;;  %v619_v33 = vpack.c.bf16 %v99_v32, %v98_v31  ;;  %v83_v34 = vld [vmem:[#allocation2 + $0x8] sm:$0xff]  ;;  %v198_v35 = vld [vmem:[#allocation7 + $0x30] sm:$0xff]  ;;  %v200_v38 = vld [vmem:[#allocation7 + $0x40] sm:$0xff] }
  0x52   :  { %600 = vmatprep.subr.bf16.mxu0 %v599_v8  ;;  %v199_v36 = vld [vmem:[#allocation7 + $0x38] sm:$0xff]  ;;  %v201_v39 = vld [vmem:[#allocation7 + $0x48] sm:$0xff]  ;;  %v202_v41 = vld [vmem:[#allocation7 + $0x50] sm:$0xff] }
  0x53   :  { %v635_v37 = vpack.c.bf16 %v199_v36, %v198_v35  ;;  %v639_v40 = vpack.c.bf16 %v201_v39, %v200_v38  ;;  %v203_v42 = vld [vmem:[#allocation7 + $0x58] sm:$0xff]  ;;  %v204_v44 = vld [vmem:[#allocation7 + $0x60] sm:$0xff]  ;;  %v205_v45 = vld [vmem:[#allocation7 + $0x68] sm:$0xff] }
  0x54   :  { %630 = vmatpush3.bf16.msra.mxu1 %v627_v17  ;;  %v643_v43 = vpack.c.bf16 %v203_v42, %v202_v41  ;;  %v647_v46 = vpack.c.bf16 %v205_v45, %v204_v44  ;;  %v206_v47 = vld [vmem:[#allocation7 + $0x70] sm:$0xff]  ;;  %v207_v48 = vld [vmem:[#allocation7 + $0x78] sm:$0xff]  ;;  %v300_v50 = vld [vmem:[#allocation8] sm:$0xff] }
  0x55   :  { %602 = vmatpush3.bf16.msra.mxu0 %v599_v8  ;;  %632 = vmatprep.subr.bf16.mxu1 %v631_v23  ;;  %v651_v49 = vpack.c.bf16 %v207_v48, %v206_v47  ;;  %v301_v51 = vld [vmem:[#allocation8 + $0x8] sm:$0xff]  ;;  %v302_v52 = vld [vmem:[#allocation8 + $0x10] sm:$0xff]  ;;  %v303_v54 = vld [vmem:[#allocation8 + $0x18] sm:$0xff] }
  0x56   :  { %604 = vmatprep.subr.bf16.mxu0 %v603_v20  ;;  %v655_v53 = vpack.c.bf16 %v301_v51, %v300_v50  ;;  %v659_v55 = vpack.c.bf16 %v303_v54, %v302_v52  ;;  %v304_v56 = vld [vmem:[#allocation8 + $0x20] sm:$0xff]  ;;  %v305_v57 = vld [vmem:[#allocation8 + $0x28] sm:$0xff]  ;;  %v429_v59 = vld [vmem:[%s971_s2] ss:$0 sm:$0xff] }
  0x57   :  { %v663_v58 = vpack.c.bf16 %v305_v57, %v304_v56  ;;  %v306_v10 = vld [vmem:[#allocation8 + $0x30] sm:$0xff]  ;;  %v307_v11 = vld [vmem:[#allocation8 + $0x38] sm:$0xff]  ;;  %v308_v13 = vld [vmem:[#allocation8 + $0x40] sm:$0xff] }
  0x58   :  { %634 = vmatpush3.bf16.msra.mxu1 %v631_v23  ;;  %v667_v12 = vpack.c.bf16 %v307_v11, %v306_v10  ;;  %v309_v14 = vld [vmem:[#allocation8 + $0x48] sm:$0xff]  ;;  %v310_v16 = vld [vmem:[#allocation8 + $0x50] sm:$0xff]  ;;  %v311_v17 = vld [vmem:[#allocation8 + $0x58] sm:$0xff] }
  0x59   :  { %606 = vmatpush3.bf16.msra.mxu0 %v603_v20  ;;  %636 = vmatprep.subr.bf16.mxu1 %v635_v37  ;;  %v671_v15 = vpack.c.bf16 %v309_v14, %v308_v13  ;;  %v675_v18 = vpack.c.bf16 %v311_v17, %v310_v16  ;;  %v312_v19 = vld [vmem:[#allocation8 + $0x60] sm:$0xff]  ;;  %v313_v20 = vld [vmem:[#allocation8 + $0x68] sm:$0xff]  ;;  %v314_v22 = vld [vmem:[#allocation8 + $0x70] sm:$0xff] }
  0x5a   :  { %608 = vmatprep.subr.bf16.mxu0 %v607_v24  ;;  %v679_v21 = vpack.c.bf16 %v313_v20, %v312_v19  ;;  %v315_v23 = vld [vmem:[#allocation8 + $0x78] sm:$0xff]  ;;  %v430_v25 = vld [vmem:[%s973_s4] ss:$0 sm:$0xff] }
  0x5c   :  { %638 = vmatpush3.bf16.msra.mxu1 %v635_v37 }
  0x5d   :  { %610 = vmatpush3.bf16.msra.mxu0 %v607_v24  ;;  %640 = vmatprep.subr.bf16.mxu1 %v639_v40  ;;  %v683_v24 = vpack.c.bf16 %v315_v23, %v314_v22 }
  0x5e   :  { %612 = vmatprep.subr.bf16.mxu0 %v611_v27 }
  0x60   :  { %642 = vmatpush3.bf16.msra.mxu1 %v639_v40  ;;  %v431_v40 = vld [vmem:[%s975_s6] ss:$0 sm:$0xff]  ;;  %s794_s6 = scalar_lea.vmem %s416_s8, 256 }
  0x61   :  { %614 = vmatpush3.bf16.msra.mxu0 %v611_v27  ;;  %644 = vmatprep.subr.bf16.mxu1 %v643_v43  ;;  %p795_p4 = scmp.ne.s32.totalorder %s416_s8, %s794_s6  ;;  %p800_p6 = scmp.lt.s32.totalorder %s794_s6, %s794_s6 }
  0x62   :  { %616 = vmatprep.subr.bf16.mxu0 %v615_v30 }
  0x63   :  { %p801_p7 = por %p800_p6, %p799_p5 }
  0x64   :  { %646 = vmatpush3.bf16.msra.mxu1 %v643_v43 }
  0x65   :  { %618 = vmatpush3.bf16.msra.mxu0 %v615_v30  ;;  %648 = vmatprep.subr.bf16.mxu1 %v647_v46  ;;  %p802_p8 = pnand %p801_p7, %p795_p4 }
  0x66   :  { %620 = vmatprep.subr.bf16.mxu0 %v619_v33 }
  0x68   :  { %650 = vmatpush3.bf16.msra.mxu1 %v647_v46 }
  0x69   :  { %622 = vmatpush3.bf16.msra.mxu0 %v619_v33  ;;  %652 = vmatprep.subr.bf16.mxu1 %v651_v49 }
  0x6a   :  { %656 = vmatprep.subr.bf16.mxu0 %v655_v53 }
  0x6c   :  { %519 = vmatmul.mubr.f32.vlgmr.msra.gmra.mrb[0].mxu0 %v83_v34  ;;  %654 = vmatpush3.bf16.msra.mxu1 %v651_v49 }
  0x6d   :  { %658 = vmatpush3.bf16.msra.mxu0 %v655_v53 }
  0x6e   :  { %660 = vmatprep.subr.bf16.mxu0 %v659_v55 }
  0x71   :  { %662 = vmatpush3.bf16.msra.mxu0 %v659_v55 }
  0x72   :  { %664 = vmatprep.subr.bf16.mxu0 %v663_v58 }
  0x75   :  { %666 = vmatpush3.bf16.msra.mxu0 %v663_v58 }
  0x76   :  { %668 = vmatprep.subr.bf16.mxu0 %v667_v12 }
  0x79   :  { %670 = vmatpush3.bf16.msra.mxu0 %v667_v12 }
  0x7a   :  { %672 = vmatprep.subr.bf16.mxu0 %v671_v15 }
  0x7d   :  { %674 = vmatpush3.bf16.msra.mxu0 %v671_v15 }
  0x7e   :  { %676 = vmatprep.subr.bf16.mxu0 %v675_v18 }
  0x81   :  { %678 = vmatpush3.bf16.msra.mxu0 %v675_v18 }
  0x82   :  { %680 = vmatprep.subr.bf16.mxu0 %v679_v21 }
  0x85   :  { %682 = vmatpush3.bf16.msra.mxu0 %v679_v21 }
  0x86   :  { %684 = vmatprep.subr.bf16.mxu0 %v683_v24 }
  0x89   :  { %686 = vmatpush3.bf16.msra.mxu0 %v683_v24 }
 0x13f   :  { %v520_v60 = vpop.f32.mrb[0].mxu0 }
 0x140   :  { %v179_v61 = vadd.f32 %v520_v60, %v429_v59  ;;  %v173_v62 = vpop.f32.mrb[1].mxu0 }
 0x141   :  { %v174_v63 = vadd.f32 %v429_v59, %v173_v62 }
 0x142   :  { %v185_v0 = vmul.f32 0.70710677, %v179_v61  ;;  %v183_v7 = vmul.f32 0.5, %v179_v61 }
 0x143   :  { %v184_v1 = vmul.f32 0.70710677, %v174_v63  ;;  %v182_v5 = vmul.f32 0.5, %v174_v63 }
 0x144   :  { %694 = verf.f32 %v185_v0 }
 0x145   :  { %696 = verf.f32 %v184_v1 }
 0x14e   :  { %v695_v2 = vpop.eup %694 }
 0x14f   :  { %v697_v3 = vpop.eup %696  ;;  %v189_v4 = vadd.f32 1.0, %v695_v2 }
 0x150   :  { %v188_v6 = vadd.f32 1.0, %v697_v3 }
 0x151   :  { %v191_v9 = vmul.f32 %v189_v4, %v183_v7 }
 0x152   :  { %v190_v8 = vmul.f32 %v188_v6, %v182_v5 }
 0x154   :  { %553 = vmatprep.mubr.f32.mxu1 %v190_v8 }
 0x155   :  { %554 = vmatmul.mubr.f32.vlgmr.msra.gmra.mrb[0].mxu1 %v191_v9 }
 0x228   :  { %v555_v26 = vpop.f32.mrb[0].mxu1 }
 0x229   :  { %v287_v27 = vadd.f32 %v555_v26, %v430_v25  ;;  %v281_v28 = vpop.f32.mrb[1].mxu1 }
 0x22a   :  { %v282_v29 = vadd.f32 %v430_v25, %v281_v28 }
 0x22b   :  { %v293_v30 = vmul.f32 0.70710677, %v287_v27  ;;  %v291_v37 = vmul.f32 0.5, %v287_v27 }
 0x22c   :  { %v292_v31 = vmul.f32 0.70710677, %v282_v29  ;;  %v290_v35 = vmul.f32 0.5, %v282_v29 }
 0x22d   :  { %698 = verf.f32 %v293_v30 }
 0x22e   :  { %700 = verf.f32 %v292_v31 }
 0x237   :  { %v699_v32 = vpop.eup %698 }
 0x238   :  { %v701_v33 = vpop.eup %700  ;;  %v297_v34 = vadd.f32 1.0, %v699_v32 }
 0x239   :  { %v296_v36 = vadd.f32 1.0, %v701_v33 }
 0x23a   :  { %v299_v39 = vmul.f32 %v297_v34, %v291_v37 }
 0x23b   :  { %v298_v38 = vmul.f32 %v296_v36, %v290_v35 }
 0x23d   :  { %588 = vmatprep.mubr.f32.mxu0 %v298_v38 }
 0x23e   :  { %589 = vmatmul.mubr.f32.vlgmr.msra.gmra.mrb[2].mxu0 %v299_v39 }
 0x311   :  { %v590_v41 = vpop.f32.mrb[2].mxu0 }
 0x312   :  { %v395_v42 = vadd.f32 %v590_v41, %v431_v40  ;;  %v389_v43 = vpop.f32.mrb[3].mxu0 }
 0x313   :  { %v390_v44 = vadd.f32 %v431_v40, %v389_v43 }
 0x314   :  { %v401_v45 = vmul.f32 0.70710677, %v395_v42  ;;  %v399_v49 = vmul.f32 0.5, %v395_v42 }
 0x315   :  { %v400_v46 = vmul.f32 0.70710677, %v390_v44  ;;  %v398_v51 = vmul.f32 0.5, %v390_v44 }
 0x316   :  { %702 = verf.f32 %v401_v45 }
 0x317   :  { %704 = verf.f32 %v400_v46 }
 0x320   :  { %v703_v47 = vpop.eup %702 }
 0x321   :  { %v705_v48 = vpop.eup %704  ;;  %v405_v50 = vadd.f32 1.0, %v703_v47 }
 0x322   :  { %v404_v52 = vadd.f32 1.0, %v705_v48 }
 0x323   :  { %v407_v53 = vmul.f32 %v405_v50, %v399_v49 }
 0x324   :  { %v406_v54 = vmul.f32 %v404_v52, %v398_v51 }
 0x325   :  { %409 = vst [vmem:[#allocation10 + $0x8] sm:$0xff] %v407_v53 }
 0x326   :  { %408 = vst [vmem:[#allocation10] sm:$0xff] %v406_v54 }
 0x327   :  { %805 = shalt.err (!%p802_p8)
}
 0x328   :  { %s806_s11 = scalar_lea.hbm %s976_s7, 256 }
 0x329   :  { %p807_p9 = scmp.ne.s32.totalorder %s976_s7, %s806_s11  ;;  %p810_p10 = scmp.lt.u32.totalorder %s806_s11, %s976_s7 }
 0x32b   :  { %p812_p11 = pnand %p810_p10, %p807_p9 }
 0x32d   :  { %815 = shalt.err (!%p812_p11)
}
 0x32e   :  { %421 = dma.vmem_to_hbm [thread:$0]  %s416_s8, 256, %s976_s7, [#allocation4], %s826_s13, %s826_s13, %s827_s14  }
 0x32f   :  { %822 = dma.done.wait [#allocation4], 256  }
 0x330   :  { %823 = vsyncadd [#allocation4], 4294967040 }
 0x331   :  { %425 = vsyncpa [#allocation3], 1 }
 0x332   :  { %426 = vsyncpa [#allocation6], 1 }
 0x333   :  { %427 = vsyncpa [#allocation9], 1 }
 0x334   :  { %428 = vsyncpa [#allocation4], 1 }

</bundles_post_ra>
